<compile_context>
chip_gen: v7x
topology: tpu7x:2x2x1
jax: 0.10.0
libtpu: 0.0.40
codegen_flags: <defaults>
</compile_context>

<pallas_src>
import jax
import jax.numpy as jnp
from jax.experimental import pallas as pl
from jax.experimental.pallas import tpu as pltpu

INPUT_SIZE = 4
HIDDEN_SIZE = 8
NUM_CLASSES = 3

TILE_B_MAX = 8192  # (4+3)*8192*4B, double-buffered ≈ 0.45 MiB VMEM: safe on all gens.


def _round_up(v: int, m: int) -> int:
    return ((v + m - 1) // m) * m


def mlp_kernel(xT_ref, w1t_ref, b1_ref, w2t_ref, b2_ref, o_ref):
    # xT_ref : (4, TILE_B)  batch on lanes
    # w1t_ref: (8, 4), b1_ref: (8, 1), w2t_ref: (3, 8), b2_ref: (3, 1)
    xT = xT_ref[...]
    h = jnp.dot(w1t_ref[...], xT, preferred_element_type=jnp.float32) + b1_ref[...]
    h = jnp.maximum(h, 0.0)                                     # (8, TILE_B) on VPU
    out = jnp.dot(w2t_ref[...], h, preferred_element_type=jnp.float32) + b2_ref[...]
    o_ref[...] = out.astype(o_ref.dtype)                        # (3, TILE_B) lane-dense store


def iris_classifier(x, w1, b1, w2, b2):
    """x: (B, 4) f32, w1: (4, 8), b1: (1, 8), w2: (8, 3), b2: (1, 3) -> (B, 3) f32."""
    B = x.shape[0]

    # Tile size: multiple of 128 lanes; small batches collapse to a single tile.
    tile_b = min(TILE_B_MAX, _round_up(B, 128))
    num_tiles = pl.cdiv(B, tile_b)
    b_padded = num_tiles * tile_b

    # Pad batch and transpose so batch lies on the lane axis (one fused XLA copy).
    pad = b_padded - B
    x_p = jnp.pad(x, ((0, pad), (0, 0))) if pad else x
    xT = x_p.T                     # (4, b_padded)
    w1t = w1.T                     # (8, 4)
    b1c = b1.T                     # (8, 1)  broadcast across lanes (batch)
    w2t = w2.T                     # (3, 8)
    b2c = b2.T                     # (3, 1)

    out_t = pl.pallas_call(
        mlp_kernel,
        out_shape=jax.ShapeDtypeStruct((NUM_CLASSES, b_padded), jnp.float32),
        grid=(num_tiles,),
        in_specs=[
            pl.BlockSpec((INPUT_SIZE, tile_b), lambda i: (0, i)),        # x^T tile
            pl.BlockSpec((HIDDEN_SIZE, INPUT_SIZE), lambda i: (0, 0)),   # W1^T resident
            pl.BlockSpec((HIDDEN_SIZE, 1), lambda i: (0, 0)),            # b1 resident
            pl.BlockSpec((NUM_CLASSES, HIDDEN_SIZE), lambda i: (0, 0)),  # W2^T resident
            pl.BlockSpec((NUM_CLASSES, 1), lambda i: (0, 0)),            # b2 resident
        ],
        out_specs=pl.BlockSpec((NUM_CLASSES, tile_b), lambda i: (0, i)),
        compiler_params=pltpu.CompilerParams(
            dimension_semantics=("parallel",),  # megacore shard on v7x; no-op elsewhere
        ),
    )(xT, w1t, b1c, w2t, b2c)

    return out_t[:, :B].T          # back to (B, 3)


def init_params(key):
    """Deterministic init mimicking PyTorch nn.Linear defaults:
    U(-1/sqrt(fan_in), 1/sqrt(fan_in)) for both weights and biases."""
    k1, k2, k3, k4 = jax.random.split(key, 4)
    bound1 = 1.0 / jnp.sqrt(INPUT_SIZE)
    bound2 = 1.0 / jnp.sqrt(HIDDEN_SIZE)
    # Stored as (in, out) so the reference / wrapper can do x @ W directly.
    w1 = jax.random.uniform(k1, (INPUT_SIZE, HIDDEN_SIZE), jnp.float32, -bound1, bound1)
    b1 = jax.random.uniform(k2, (1, HIDDEN_SIZE), jnp.float32, -bound1, bound1)
    w2 = jax.random.uniform(k3, (HIDDEN_SIZE, NUM_CLASSES), jnp.float32, -bound2, bound2)
    b2 = jax.random.uniform(k4, (1, NUM_CLASSES), jnp.float32, -bound2, bound2)
    return w1, b1, w2, b2


if __name__ == "__main__":
    key = jax.random.PRNGKey(0)
    kx, kx2, kp = jax.random.split(key, 3)

    w1, b1, w2, b2 = init_params(kp)

    # Small (Iris-scale) batch — single tile, exercises the lane-padding path.
    batch = 8
    x = jax.random.normal(kx, (batch, INPUT_SIZE), jnp.float32)
    out = jax.block_until_ready(iris_classifier(x, w1, b1, w2, b2))
    ref = jnp.maximum(x @ w1 + b1, 0.0) @ w2 + b2
    assert out.shape == (batch, NUM_CLASSES)
    assert jnp.allclose(out, ref, atol=1e-5, rtol=1e-5)

    # Non-multiple-of-128 batch — exercises padding + slice-back correctness.
    batch2 = 300
    x2 = jax.random.normal(kx2, (batch2, INPUT_SIZE), jnp.float32)
    out2 = jax.block_until_ready(iris_classifier(x2, w1, b1, w2, b2))
    ref2 = jnp.maximum(x2 @ w1 + b1, 0.0) @ w2 + b2
    assert out2.shape == (batch2, NUM_CLASSES)
    assert jnp.allclose(out2, ref2, atol=1e-5, rtol=1e-5)

    print("KERNEL_OK")
</pallas_src>

<mosaic_0001>
module attributes {stable_mosaic.version = 11 : i64} {
  func.func @mlp_kernel(%arg0: i32, %arg1: memref<4x128xf32, #tpu.memory_space<vmem>>, %arg2: memref<8x4xf32, #tpu.memory_space<vmem>>, %arg3: memref<8x1xf32, #tpu.memory_space<vmem>>, %arg4: memref<3x8xf32, #tpu.memory_space<vmem>>, %arg5: memref<3x1xf32, #tpu.memory_space<vmem>>, %arg6: memref<3x128xf32, #tpu.memory_space<vmem>>) attributes {dimension_semantics = [#tpu.dimension_semantics<parallel>], iteration_bounds = array<i64: 1>, scalar_prefetch = 0 : i64, scratch_operands = 0 : i64, tpu.core_type = #tpu.core_type<tc>, window_params = [{transform_indices = @transform_0, window_bounds = array<i64: 4, 128>}, {pipeline_mode = #tpu.pipeline_mode<synchronous>, transform_indices = @transform_1, window_bounds = array<i64: 8, 4>}, {pipeline_mode = #tpu.pipeline_mode<synchronous>, transform_indices = @transform_2, window_bounds = array<i64: 8, 1>}, {pipeline_mode = #tpu.pipeline_mode<synchronous>, transform_indices = @transform_3, window_bounds = array<i64: 3, 8>}, {pipeline_mode = #tpu.pipeline_mode<synchronous>, transform_indices = @transform_4, window_bounds = array<i64: 3, 1>}, {transform_indices = @transform_5, window_bounds = array<i64: 3, 128>}]} {
    %c0 = arith.constant 0 : index
    %c0_0 = arith.constant 0 : index
    %0 = vector.load %arg1[%c0, %c0_0] : memref<4x128xf32, #tpu.memory_space<vmem>>, vector<4x128xf32>
    %c0_1 = arith.constant 0 : index
    %c0_2 = arith.constant 0 : index
    %1 = vector.load %arg2[%c0_1, %c0_2] : memref<8x4xf32, #tpu.memory_space<vmem>>, vector<8x4xf32>
    %cst = arith.constant dense<0.000000e+00> : vector<8x128xf32>
    %2 = tpu.matmul %1, %0, %cst {dimension_numbers = #tpu.dot_dimension_numbers<[1], [0], [0], [1], [0, 0, 1, 1], [], []>} : vector<8x4xf32>, vector<4x128xf32>, vector<8x128xf32> -> vector<8x128xf32>
    %c0_3 = arith.constant 0 : index
    %c0_4 = arith.constant 0 : index
    %3 = vector.load %arg3[%c0_3, %c0_4] : memref<8x1xf32, #tpu.memory_space<vmem>>, vector<8x1xf32>
    %4 = vector.broadcast %3 : vector<8x1xf32> to vector<8x128xf32>
    %5 = arith.addf %2, %4 : vector<8x128xf32>
    %cst_5 = arith.constant 0.000000e+00 : f32
    %6 = vector.broadcast %cst_5 : f32 to vector<8x128xf32>
    %7 = arith.maximumf %5, %6 : vector<8x128xf32>
    %c0_6 = arith.constant 0 : index
    %c0_7 = arith.constant 0 : index
    %8 = vector.load %arg4[%c0_6, %c0_7] : memref<3x8xf32, #tpu.memory_space<vmem>>, vector<3x8xf32>
    %cst_8 = arith.constant dense<0.000000e+00> : vector<3x128xf32>
    %9 = tpu.matmul %8, %7, %cst_8 {dimension_numbers = #tpu.dot_dimension_numbers<[1], [0], [0], [1], [0, 0, 1, 1], [], []>} : vector<3x8xf32>, vector<8x128xf32>, vector<3x128xf32> -> vector<3x128xf32>
    %c0_9 = arith.constant 0 : index
    %c0_10 = arith.constant 0 : index
    %10 = vector.load %arg5[%c0_9, %c0_10] : memref<3x1xf32, #tpu.memory_space<vmem>>, vector<3x1xf32>
    %11 = vector.broadcast %10 : vector<3x1xf32> to vector<3x128xf32>
    %12 = arith.addf %9, %11 : vector<3x128xf32>
    %c0_11 = arith.constant 0 : index
    %c0_12 = arith.constant 0 : index
    %13 = vector.load %arg6[%c0_11, %c0_12] : memref<3x128xf32, #tpu.memory_space<vmem>>, vector<3x128xf32>
    tpu.vector_store %arg6[%c0_11, %c0_12], %12 {strides = array<i32>} : memref<3x128xf32, #tpu.memory_space<vmem>>, vector<3x128xf32>,
    return
  }
  func.func @transform_0(%arg0: i32) -> (i32, i32) {
    %c0_i32 = arith.constant 0 : i32
    %c0_i32_0 = arith.constant 0 : i32
    return %c0_i32, %arg0 : i32, i32
  }
  func.func @transform_1(%arg0: i32) -> (i32, i32) {
    %c0_i32 = arith.constant 0 : i32
    %c0_i32_0 = arith.constant 0 : i32
    %c0_i32_1 = arith.constant 0 : i32
    return %c0_i32, %c0_i32_0 : i32, i32
  }
  func.func @transform_2(%arg0: i32) -> (i32, i32) {
    %c0_i32 = arith.constant 0 : i32
    %c0_i32_0 = arith.constant 0 : i32
    %c0_i32_1 = arith.constant 0 : i32
    return %c0_i32, %c0_i32_0 : i32, i32
  }
  func.func @transform_3(%arg0: i32) -> (i32, i32) {
    %c0_i32 = arith.constant 0 : i32
    %c0_i32_0 = arith.constant 0 : i32
    %c0_i32_1 = arith.constant 0 : i32
    return %c0_i32, %c0_i32_0 : i32, i32
  }
  func.func @transform_4(%arg0: i32) -> (i32, i32) {
    %c0_i32 = arith.constant 0 : i32
    %c0_i32_0 = arith.constant 0 : i32
    %c0_i32_1 = arith.constant 0 : i32
    return %c0_i32, %c0_i32_0 : i32, i32
  }
  func.func @transform_5(%arg0: i32) -> (i32, i32) {
    %c0_i32 = arith.constant 0 : i32
    %c0_i32_0 = arith.constant 0 : i32
    return %c0_i32, %arg0 : i32, i32
  }
}

</mosaic_0001>

<bundles_post_ra>
// kernel: tpu_custom_call.1
= control target key start
LH: loop header
LB: loop body
LE: loop exit
PB: predicated region body
PF: predicated region fallthrough
CT: control target
= control target key end

     0   :  { %vm33_vm0 = vcmask 1043456   ;;  %v250_v2 = vmov 0.0   ;;  %vm251_vm1 = vmmov 0   ;;  %vm29_vm2 = vcmask 31744   ;;  %s311_s0 = inlined_call_operand.vmem [shape: f32[4,128], index: 0, kind: input, shape index: {}]   ;;  %s312_s1 = inlined_call_operand.vmem [shape: f32[8,4], index: 1, kind: input, shape index: {}]   ;;  %s313_s2 = inlined_call_operand.vmem [shape: f32[8,1], index: 2, kind: input, shape index: {}]   ;;  %s314_s3 = inlined_call_operand.vmem [shape: f32[3,8], index: 3, kind: input, shape index: {}]   ;;  %s315_s4 = inlined_call_operand.vmem [shape: f32[3,1], index: 4, kind: input, shape index: {}]   ;;  %s316_s5 = inlined_call_operand.hbm [shape: f32[3,128], index: 5, kind: output, shape index: {}]  }
   0x1   :  { %v21_v0 = vld [vmem:[%s311_s0] sm:$0xf]  ;;  %211 = vmatprep.subr.mxu0 %v250_v2  ;;  %213 = vmatprep.mubr.msk.f32.mxu0 %vm251_vm1, %v250_v2  ;;  %v252_v4 = vmov 0  }
   0x2   :  { %v22_v1 = vld [vmem:[%s312_s1] sm:$0xff]  ;;  %212 = vmatpush3.msk.msra.mxu0 %vm33_vm0, %v21_v0  ;;  %225 = vset.pattern.permute.xlu0 %v252_v4 }
   0x3   :  { %v23_v3 = vld [vmem:[%s313_s2] sm:$0xff] }
   0x4   :  { %10 = vsyncpa [#allocation3], 0  ;;  %214 = vmatmul.mubr.msk.f32.vlgmr.msra.gmra.mrb[0].mxu0 %vm29_vm2, %v22_v1  ;;  %26 = vperm.xlu0 %225, %v23_v3   ;;  %v109_v5 = vld [vmem:[%s315_s4] sm:$0x7]  ;;  %vm115_vm3 = vcmask 64512   ;;  %s253_s25 = smov [#allocation2]  }
   0x5   :  { %216 = vmatprep.subr.mxu1 %v250_v2  ;;  %218 = vmatprep.mubr.msk.f32.mxu1 %vm251_vm1, %v250_v2  ;;  %v108_v11 = vld [vmem:[%s314_s3] sm:$0x7]  ;;  %s196_s26 = sshll.u32 %s253_s25, 4  ;;  %s197_s26 = int_to_ptr.vmem [resolvable:$true] %s196_s26 }
   0x6   :  { %s226_s4 = scalar_lea.vmem %s197_s26, 64  ;;  %p231_p1 = scmp.lt.s32.totalorder %s197_s26, %s197_s26 }
   0x7   :  { %p227_p0 = scmp.ne.s32.totalorder %s197_s26, %s226_s4  ;;  %p232_p2 = scmp.lt.s32.totalorder %s226_s4, %s226_s4 }
   0x8   :  { %112 = vperm.xlu0 %225, %v109_v5  }
   0x9   :  { %p233_p3 = por %p232_p2, %p231_p1 }
   0xb   :  { %p234_p4 = pnand %p233_p3, %p227_p0 }
  0x83   :  { %v27_v6 = vpop.permute.xlu0 %26 }
  0x87   :  { %v113_v12 = vpop.permute.xlu0 %112 }
  0xd7   :  { %v103_v7 = vpop.f32.mrb[0].mxu0 }
  0xd8   :  { %v104_v8 = vadd.f32 %v103_v7, %v27_v6  ;;  %v215_v9 = vpop.f32.mrb[1].mxu0 }
  0xda   :  { %v107_v10 = vmax.f32 %v104_v8, 0.0 }
  0xdc   :  { %217 = vmatpush3.msra.mxu1 %v107_v10 }
  0xdd   :  { %219 = vmatmul.mubr.msk.f32.vlgmr.msra.gmra.mrb[0].mxu1 %vm115_vm3, %v108_v11 }
 0x1b0   :  { %v185_v13 = vpop.f32.mrb[0].mxu1 }
 0x1b1   :  { %v186_v14 = vadd.f32 %v185_v13, %v113_v12  ;;  %v220_v15 = vpop.f32.mrb[1].mxu1 }
 0x1b3   :  { %189 = vst [vmem:[#allocation2] sm:$0x7] %v186_v14 }
 0x1b4   :  { %237 = shalt.err (!%p234_p4)
}
 0x1b5   :  { %s238_s28 = scalar_lea.hbm %s316_s5, 64 }
 0x1b6   :  { %p239_p5 = scmp.ne.s32.totalorder %s316_s5, %s238_s28  ;;  %p242_p6 = scmp.lt.u32.totalorder %s238_s28, %s316_s5 }
 0x1b8   :  { %p244_p7 = pnand %p242_p6, %p239_p5 }
 0x1ba   :  { %247 = shalt.err (!%p244_p7)
}
 0x1bb   :  { %199 = dma.vmem_to_hbm [thread:$0]  %s197_s26, 64, %s316_s5, [#allocation3]  }
 0x1bc   :  { %248 = dma.done.wait [#allocation3], 64  }
 0x1bd   :  { %249 = vsyncadd [#allocation3], 4294967232 }
 0x1be   :  { %203 = vsyncpa [#allocation3], 1 }

</bundles_post_ra>
